<compile_context>
chip_gen: v5e
topology: v5e:2x2
jax: 0.10.0
libtpu: 0.0.40
codegen_flags: <defaults>
</compile_context>

<pallas_src>
import jax
import jax.numpy as jnp
from jax.experimental import pallas as pl
from jax.experimental.pallas import tpu as pltpu


def _add_one_kernel(x_ref, o_ref):
    # Pure VPU elementwise add; dtype-preserving.
    o_ref[...] = x_ref[...] + jnp.asarray(1, dtype=x_ref.dtype)


def _round_up(a: int, m: int) -> int:
    return -(-a // m) * m


_TARGET_BLOCK_BYTES = 8 << 20      # ~8 MiB per buffer
_VMEM_LIMIT_BYTES = 48 << 20       # 4 resident buffers * ~8-12 MiB fits with headroom
_SMALL_FALLBACK_BYTES = 512 << 10  # below this, plain XLA wins
_SPLIT2_MIN_BYTES = 4 << 20        # medium tensors: 2 balanced blocks for v7x megacore


def _pick_flat_lanes(n: int):
    """Largest lane width that divides n exactly and leaves >= 8 rows."""
    for cand in (4096, 2048, 1024, 512, 256, 128):
        if n % cand == 0 and n // cand >= 8:
            return cand
    return None


def add_one(x: jax.Array, *, min_kernel_bytes: int = _SMALL_FALLBACK_BYTES) -> jax.Array:
    """Computes x + 1 with a Pallas TPU kernel (any shape/dtype)."""
    n = x.size
    if n == 0:
        return x
    dtype = x.dtype
    itemsize = jnp.dtype(dtype).itemsize
    total_bytes = n * itemsize
    one = jnp.asarray(1, dtype=dtype)

    # Tiny tensors: kernel launch + reshape overhead dominates.
    # TODO(synk): make this threshold generation-aware (larger on v7x).
    if total_bytes <= min_kernel_bytes:
        return x + one

    orig_shape = x.shape

    # ---- choose a row-major (rows, lanes) slab; lane dim is always FULL ----
    lanes = _pick_flat_lanes(n) if n % 128 == 0 else None
    if lanes is not None:
        rows = n // lanes                       # lane-dense, 128-aligned slab
    elif x.ndim >= 2:
        lanes = orig_shape[-1]                  # natural slab; full (maybe ragged) lane dim
        rows = n // lanes
    elif total_bytes <= _TARGET_BLOCK_BYTES:
        rows, lanes = 1, n                      # small 1-D ragged: single full block
    else:
        # TODO(synk): huge factorization-hostile 1-D ragged sizes would need a
        # manual-DMA repack path; plain XLA already runs them at HBM roofline.
        return x + one

    # Note: reshape is metadata-only for default-contiguous inputs.
    x2d = x.reshape(rows, lanes)

    # Sublane alignment covering f32(8) / bf16(16) / int8+fp8(32).
    sub = max(8, 32 // max(itemsize, 1))

    # Row tile from the per-buffer byte target (always a multiple of `sub`,
    # or the full row extent).
    tile_rows = max(sub, (_TARGET_BLOCK_BYTES // (lanes * itemsize)) // sub * sub)
    tile_rows = min(tile_rows, rows)

    grid_n = pl.cdiv(rows, tile_rows)
    if grid_n == 1:
        # Medium tensors: give both v7x TensorCores balanced work.
        if total_bytes >= _SPLIT2_MIN_BYTES and rows >= 2 * sub:
            tile_rows = min(rows, _round_up(pl.cdiv(rows, 2), sub))
            grid_n = pl.cdiv(rows, tile_rows)
    elif grid_n < 8:
        # Few blocks: use an even count of near-equal blocks so the contiguous
        # 2-core split is balanced; negligible extra steps on 1-TC chips.
        grid_even = grid_n + (grid_n % 2)
        tile_rows = min(rows, max(sub, _round_up(pl.cdiv(rows, grid_even), sub)))
        grid_n = pl.cdiv(rows, tile_rows)

    # Hard guard: never let one block (in + out, double-buffered) blow VMEM.
    if tile_rows * lanes * itemsize > _VMEM_LIMIT_BYTES // 4:
        # TODO(synk): too few rows / very wide ragged lane dim to tile without
        # partial lane blocks; would need manual-DMA repack. XLA fallback.
        return x + one

    out2d = pl.pallas_call(
        _add_one_kernel,
        out_shape=jax.ShapeDtypeStruct((rows, lanes), dtype),
        grid=(grid_n,),
        in_specs=[pl.BlockSpec((tile_rows, lanes), lambda i: (i, 0))],
        out_specs=pl.BlockSpec((tile_rows, lanes), lambda i: (i, 0)),
        compiler_params=pltpu.CompilerParams(
            dimension_semantics=("parallel",),    # shard grid across v7x cores
            vmem_limit_bytes=_VMEM_LIMIT_BYTES,
        ),
    )(x2d)

    return out2d.reshape(orig_shape)


if __name__ == "__main__":
    key = jax.random.PRNGKey(0)
    k1, k2, k3, k4 = jax.random.split(key, 4)

    # Module-consistent small shape; force the kernel path (skip XLA fallback).
    x_small = jax.random.normal(k1, (2, 4, 16, 16), dtype=jnp.float32)
    y_small = add_one(x_small, min_kernel_bytes=0)

    # Larger lane-aligned f32 input: 2 balanced (128, 4096) blocks, grid = 2.
    x_big = jax.random.normal(k2, (8, 128, 1024), dtype=jnp.float32)
    y_big = add_one(x_big)

    # Ragged last dim (not a multiple of 128): full-array (7, 333) block,
    # no pad / slice / partial lane blocks.
    x_rag = jax.random.normal(k3, (7, 333), dtype=jnp.float32)
    y_rag = add_one(x_rag, min_kernel_bytes=0)

    # bf16 exercises the dtype-aware sublane alignment.
    x_bf16 = jax.random.normal(k4, (4, 64, 128), dtype=jnp.bfloat16)
    y_bf16 = add_one(x_bf16, min_kernel_bytes=0)

    jax.block_until_ready((y_small, y_big, y_rag, y_bf16))

    for y, x in ((y_small, x_small), (y_big, x_big),
                 (y_rag, x_rag), (y_bf16, x_bf16)):
        ref = x + jnp.asarray(1, dtype=x.dtype)
        assert y.shape == ref.shape and y.dtype == ref.dtype
        assert jnp.allclose(y.astype(jnp.float32), ref.astype(jnp.float32)), \
            "mismatch vs reference"

    print("KERNEL_OK")
</pallas_src>

<mosaic_0001>
module attributes {stable_mosaic.version = 11 : i64} {
  func.func @_add_one_kernel(%arg0: i32, %arg1: memref<8x256xf32, #tpu.memory_space<vmem>>, %arg2: memref<8x256xf32, #tpu.memory_space<vmem>>) attributes {dimension_semantics = [#tpu.dimension_semantics<parallel>], iteration_bounds = array<i64: 1>, scalar_prefetch = 0 : i64, scratch_operands = 0 : i64, tpu.core_type = #tpu.core_type<tc>, window_params = [{transform_indices = @transform_0, window_bounds = array<i64: 8, 256>}, {transform_indices = @transform_1, window_bounds = array<i64: 8, 256>}]} {
    %c0 = arith.constant 0 : index
    %c0_0 = arith.constant 0 : index
    %0 = vector.load %arg1[%c0, %c0_0] : memref<8x256xf32, #tpu.memory_space<vmem>>, vector<8x256xf32>
    %cst = arith.constant 1.000000e+00 : f32
    %1 = vector.broadcast %cst : f32 to vector<8x256xf32>
    %2 = arith.addf %0, %1 : vector<8x256xf32>
    %c0_1 = arith.constant 0 : index
    %c0_2 = arith.constant 0 : index
    %3 = vector.load %arg2[%c0_1, %c0_2] : memref<8x256xf32, #tpu.memory_space<vmem>>, vector<8x256xf32>
    tpu.vector_store %arg2[%c0_1, %c0_2], %2 {strides = array<i32>} : memref<8x256xf32, #tpu.memory_space<vmem>>, vector<8x256xf32>,
    return
  }
  func.func @transform_0(%arg0: i32) -> (i32, i32) {
    %c0_i32 = arith.constant 0 : i32
    %c0_i32_0 = arith.constant 0 : i32
    return %arg0, %c0_i32 : i32, i32
  }
  func.func @transform_1(%arg0: i32) -> (i32, i32) {
    %c0_i32 = arith.constant 0 : i32
    %c0_i32_0 = arith.constant 0 : i32
    return %arg0, %c0_i32 : i32, i32
  }
}

</mosaic_0001>

<bundles_post_ra>
// kernel: tpu_custom_call.1
= control target key start
LH: loop header
LB: loop body
LE: loop exit
PB: predicated region body
PF: predicated region fallthrough
CT: control target
= control target key end

     0   :  { %6 = vsyncpa [#allocation3], 0  ;;  %s118_s0 = inlined_call_operand.hbm [shape: f32[8,256], index: 0, kind: input, shape index: {}]   ;;  %s119_s1 = inlined_call_operand.hbm [shape: f32[8,256], index: 1, kind: output, shape index: {}]  }
   0x1   :  { %7 = vsyncpa [#allocation4], 0  ;;  %s13_s8 = sshll.u32 %s118_s0, 4  ;;  %s100_s9 = smov [#allocation2]   ;;  %s14_s8 = int_to_ptr.hbm [resolvable:$true] %s13_s8 }
   0x2   :  { %s15_s10 = sshll.u32 %s100_s9, 4  ;;  %s16_s10 = int_to_ptr.vmem [resolvable:$true] %s15_s10 }
   0x3   :  { %18 = dma.hbm_to_vmem [thread:$0]  %s14_s8, 256, %s16_s10, [#allocation3]  }
   0x4   :  { %96 = dma.done.wait [#allocation3], 256  }
   0x5   :  { %97 = vsyncadd [#allocation3], 4294967040  ;;  %s101_s11 = smov [#allocation5]   ;;  %s36_s15 = sshll.u32 %s119_s1, 4  ;;  %v23_v0 = vld [vmem:[#allocation2] sm:$0xff]  ;;  %v24_v1 = vld [vmem:[#allocation2 + $0x8] sm:$0xff]  ;;  %s37_s15 = int_to_ptr.hbm [resolvable:$true] %s36_s15 }
   0x6   :  { %s34_s12 = sshll.u32 %s101_s11, 4  ;;  %v25_v2 = vadd.f32 1.0, %v23_v0  ;;  %v26_v3 = vadd.f32 1.0, %v24_v1  ;;  %s35_s12 = int_to_ptr.vmem [resolvable:$true] %s34_s12 }
   0x8   :  { %27 = vst [vmem:[#allocation5] sm:$0xff] %v25_v2 }
   0x9   :  { %28 = vst [vmem:[#allocation5 + $0x8] sm:$0xff] %v26_v3 }
   0xa   :  { %39 = dma.vmem_to_hbm [thread:$0]  %s35_s12, 256, %s37_s15, [#allocation4]  }
   0xb   :  { %98 = dma.done.wait [#allocation4], 256  }
   0xc   :  { %99 = vsyncadd [#allocation4], 4294967040 }
   0xd   :  { %44 = vsyncpa [#allocation3], 1 }
   0xe   :  { %45 = vsyncpa [#allocation4], 1 }

</bundles_post_ra>
